<compile_context>
chip_gen: v7x
topology: tpu7x:2x2x1
jax: 0.10.0
libtpu: 0.0.40
codegen_flags: <defaults>
</compile_context>

<pallas_src>
import jax
import jax.numpy as jnp
from jax.experimental import pallas as pl
from jax.experimental.pallas import tpu as pltpu

F_IN = 29
H1 = 200
H2 = 100
H1_PAD = 256      # MXU/lane-aligned hidden dims (padded lanes kept zero)
H2_PAD = 128
MAX_TILE_B = 2048  # footprint at 2048 rows ~6-7 MiB << 32 MiB scoped VMEM


def _cdiv(a, b):
    return -(-a // b)


def _round_up(n, m):
    return ((n + m - 1) // m) * m


def mlp_kernel(x_ref, w1_ref, b1_ref, w2_ref, b2_ref, w3_ref, b3_ref, o_ref):
    # x_ref: (tile_b, 29) f32 raw input (streamed). Cast to bf16 in-kernel (VPU,
    # hidden under MXU work) instead of a separate wrapper pass over HBM.
    x = x_ref[...].astype(jnp.bfloat16)

    # layer_1 + ReLU (bf16 MXU operands, f32 accumulate)
    h1 = jnp.dot(x, w1_ref[...], preferred_element_type=jnp.float32) + b1_ref[...]
    h1 = jnp.maximum(h1, 0.0).astype(jnp.bfloat16)

    # layer_2 + ReLU (keep h2 in f32 for the layer-3 VPU/XLU reduce)
    h2 = jnp.dot(h1, w2_ref[...], preferred_element_type=jnp.float32) + b2_ref[...]
    h2 = jnp.maximum(h2, 0.0)

    # layer_3: out_features == 1, so avoid an M=1 MXU matmul / h2 transpose.
    # VPU multiply + XLU lane-reduce; padded w3 lanes are zero so they don't leak.
    y = jnp.sum(h2 * w3_ref[...], axis=-1, keepdims=True) + b3_ref[...]
    o_ref[...] = y


def interruption_model_forward(x, w1t, b1, w2t, b2, w3t, b3, max_tile_b=MAX_TILE_B):
    """x: (B, 29) float32 -> (B, 1) float32.

    Weights are passed in the transposed (in, out) layout (PyTorch W.T)."""
    B, F = x.shape
    assert F == F_IN

    # One-time weight/bias prep (tiny arrays): pad hidden dims to 256/128 with zeros
    # so every MXU pass and bias-add lane group is 128-aligned; bf16 MXU operands.
    w1_p = jnp.pad(w1t, ((0, 0), (0, H1_PAD - H1))).astype(jnp.bfloat16)          # (29, 256)
    w2_p = jnp.pad(w2t, ((0, H1_PAD - H1), (0, H2_PAD - H2))).astype(jnp.bfloat16)  # (256, 128)
    w3_p = jnp.pad(w3t.reshape(1, H2).astype(jnp.float32),
                   ((0, 0), (0, H2_PAD - H2)))                                    # (1, 128) f32
    b1_p = jnp.pad(b1.reshape(1, H1).astype(jnp.float32), ((0, 0), (0, H1_PAD - H1)))
    b2_p = jnp.pad(b2.reshape(1, H2).astype(jnp.float32), ((0, 0), (0, H2_PAD - H2)))
    b3_p = b3.reshape(1, 1).astype(jnp.float32)

    # Batch tiling: at least 2 grid steps when B > 256 (v7x dual-TC sharding),
    # 256-row alignment (MXU rows on v6e/v7x, superset of v5e's 128), capped for VMEM.
    tile_b = min(max_tile_b, _round_up(max(_cdiv(B, 2), 1), 256))
    b_pad = _round_up(B, tile_b)
    x_in = x if b_pad == B else jnp.pad(x, ((0, b_pad - B), (0, 0)))
    grid = (b_pad // tile_b,)

    out = pl.pallas_call(
        mlp_kernel,
        out_shape=jax.ShapeDtypeStruct((b_pad, 1), jnp.float32),
        grid_spec=pltpu.PrefetchScalarGridSpec(
            num_scalar_prefetch=0,
            grid=grid,
            in_specs=[
                pl.BlockSpec((tile_b, F_IN), lambda i: (i, 0)),     # x tile (streamed, raw f32)
                pl.BlockSpec((F_IN, H1_PAD), lambda i: (0, 0)),     # w1 (resident)
                pl.BlockSpec((1, H1_PAD), lambda i: (0, 0)),        # b1
                pl.BlockSpec((H1_PAD, H2_PAD), lambda i: (0, 0)),   # w2
                pl.BlockSpec((1, H2_PAD), lambda i: (0, 0)),        # b2
                pl.BlockSpec((1, H2_PAD), lambda i: (0, 0)),        # w3 row (f32)
                pl.BlockSpec((1, 1), lambda i: (0, 0)),             # b3
            ],
            out_specs=pl.BlockSpec((tile_b, 1), lambda i: (i, 0)),
        ),
        compiler_params=pltpu.CompilerParams(
            dimension_semantics=("parallel",),
            vmem_limit_bytes=32 * 1024 * 1024),
    )(x_in, w1_p, b1_p, w2_p, b2_p, w3_p, b3_p)

    return out[:B]


def init_params(key):
    """Deterministic synthetic parameters matching nn.Linear shapes.
    PyTorch stores W as (out, in); we keep the transposed (in, out) layout."""
    k1, k2, k3, k4, k5, k6 = jax.random.split(key, 6)
    w1t = jax.random.normal(k1, (F_IN, H1), dtype=jnp.float32) * 0.1
    b1 = jax.random.normal(k2, (1, H1), dtype=jnp.float32) * 0.1
    w2t = jax.random.normal(k3, (H1, H2), dtype=jnp.float32) * 0.1
    b2 = jax.random.normal(k4, (1, H2), dtype=jnp.float32) * 0.1
    w3t = jax.random.normal(k5, (H2, 1), dtype=jnp.float32) * 0.1
    b3 = jax.random.normal(k6, (1, 1), dtype=jnp.float32) * 0.1
    return w1t, b1, w2t, b2, w3t, b3


def reference_forward(x, w1t, b1, w2t, b2, w3t, b3):
    h1 = jnp.maximum(x @ w1t + b1, 0.0)
    h2 = jnp.maximum(h1 @ w2t + b2, 0.0)
    return h2 @ w3t + b3


if __name__ == "__main__":
    key = jax.random.PRNGKey(0)
    kx, kx2, kp = jax.random.split(key, 3)
    params = init_params(kp)

    # Small batch (single tile).
    B = 8
    x = jax.random.normal(kx, (B, F_IN), dtype=jnp.float32)
    out = jax.block_until_ready(interruption_model_forward(x, *params))
    ref = reference_forward(x, *params)
    assert out.shape == (B, 1)
    # bf16 MXU operands -> relaxed tolerance vs the f32 reference.
    assert jnp.allclose(out, ref, atol=2e-2, rtol=2e-2)

    # Multi-tile path with a partial final tile (exercises batch grid, padding,
    # and the >=2-step tiling used for v7x dual-TC sharding).
    B2 = 2500
    x2 = jax.random.normal(kx2, (B2, F_IN), dtype=jnp.float32)
    out2 = jax.block_until_ready(interruption_model_forward(x2, *params))
    ref2 = reference_forward(x2, *params)
    assert out2.shape == (B2, 1)
    assert jnp.allclose(out2, ref2, atol=2e-2, rtol=2e-2)

    print("KERNEL_OK")
</pallas_src>

<mosaic_0001>
module attributes {stable_mosaic.version = 11 : i64} {
  func.func @mlp_kernel(%arg0: i32, %arg1: memref<256x29xf32, #tpu.memory_space<vmem>>, %arg2: memref<29x256xbf16, #tpu.memory_space<vmem>>, %arg3: memref<1x256xf32, #tpu.memory_space<vmem>>, %arg4: memref<256x128xbf16, #tpu.memory_space<vmem>>, %arg5: memref<1x128xf32, #tpu.memory_space<vmem>>, %arg6: memref<1x128xf32, #tpu.memory_space<vmem>>, %arg7: memref<1x1xf32, #tpu.memory_space<vmem>>, %arg8: memref<256x1xf32, #tpu.memory_space<vmem>>) attributes {dimension_semantics = [#tpu.dimension_semantics<parallel>], iteration_bounds = array<i64: 1>, scalar_prefetch = 0 : i64, scratch_operands = 0 : i64, tpu.core_type = #tpu.core_type<tc>, window_params = [{transform_indices = @transform_0, window_bounds = array<i64: 256, 29>}, {pipeline_mode = #tpu.pipeline_mode<synchronous>, transform_indices = @transform_1, window_bounds = array<i64: 29, 256>}, {pipeline_mode = #tpu.pipeline_mode<synchronous>, transform_indices = @transform_2, window_bounds = array<i64: 1, 256>}, {pipeline_mode = #tpu.pipeline_mode<synchronous>, transform_indices = @transform_3, window_bounds = array<i64: 256, 128>}, {pipeline_mode = #tpu.pipeline_mode<synchronous>, transform_indices = @transform_4, window_bounds = array<i64: 1, 128>}, {pipeline_mode = #tpu.pipeline_mode<synchronous>, transform_indices = @transform_5, window_bounds = array<i64: 1, 128>}, {pipeline_mode = #tpu.pipeline_mode<synchronous>, transform_indices = @transform_6, window_bounds = array<i64: 1, 1>}, {transform_indices = @transform_7, window_bounds = array<i64: 256, 1>}]} {
    %c0 = arith.constant 0 : index
    %c0_0 = arith.constant 0 : index
    %0 = vector.load %arg1[%c0, %c0_0] : memref<256x29xf32, #tpu.memory_space<vmem>>, vector<256x29xf32>
    %1 = arith.truncf %0 : vector<256x29xf32> to vector<256x29xbf16>
    %c0_1 = arith.constant 0 : index
    %c0_2 = arith.constant 0 : index
    %2 = vector.load %arg2[%c0_1, %c0_2] : memref<29x256xbf16, #tpu.memory_space<vmem>>, vector<29x256xbf16>
    %cst = arith.constant dense<0.000000e+00> : vector<256x256xf32>
    %3 = tpu.matmul %1, %2, %cst {dimension_numbers = #tpu.dot_dimension_numbers<[1], [0], [0], [1], [0, 0, 1, 1], [], []>} : vector<256x29xbf16>, vector<29x256xbf16>, vector<256x256xf32> -> vector<256x256xf32>
    %c0_3 = arith.constant 0 : index
    %c0_4 = arith.constant 0 : index
    %4 = vector.load %arg3[%c0_3, %c0_4] : memref<1x256xf32, #tpu.memory_space<vmem>>, vector<1x256xf32>
    %5 = vector.broadcast %4 : vector<1x256xf32> to vector<256x256xf32>
    %6 = arith.addf %3, %5 : vector<256x256xf32>
    %cst_5 = arith.constant 0.000000e+00 : f32
    %7 = vector.broadcast %cst_5 : f32 to vector<256x256xf32>
    %8 = arith.maximumf %6, %7 : vector<256x256xf32>
    %9 = arith.truncf %8 : vector<256x256xf32> to vector<256x256xbf16>
    %c0_6 = arith.constant 0 : index
    %c0_7 = arith.constant 0 : index
    %10 = vector.load %arg4[%c0_6, %c0_7] : memref<256x128xbf16, #tpu.memory_space<vmem>>, vector<256x128xbf16>
    %cst_8 = arith.constant dense<0.000000e+00> : vector<256x128xf32>
    %11 = tpu.matmul %9, %10, %cst_8 {dimension_numbers = #tpu.dot_dimension_numbers<[1], [0], [0], [1], [0, 0, 1, 1], [], []>} : vector<256x256xbf16>, vector<256x128xbf16>, vector<256x128xf32> -> vector<256x128xf32>
    %c0_9 = arith.constant 0 : index
    %c0_10 = arith.constant 0 : index
    %12 = vector.load %arg5[%c0_9, %c0_10] : memref<1x128xf32, #tpu.memory_space<vmem>>, vector<1x128xf32>
    %13 = vector.broadcast %12 : vector<1x128xf32> to vector<256x128xf32>
    %14 = arith.addf %11, %13 : vector<256x128xf32>
    %cst_11 = arith.constant 0.000000e+00 : f32
    %15 = vector.broadcast %cst_11 : f32 to vector<256x128xf32>
    %16 = arith.maximumf %14, %15 : vector<256x128xf32>
    %c0_12 = arith.constant 0 : index
    %c0_13 = arith.constant 0 : index
    %17 = vector.load %arg6[%c0_12, %c0_13] : memref<1x128xf32, #tpu.memory_space<vmem>>, vector<1x128xf32>
    %18 = vector.broadcast %17 : vector<1x128xf32> to vector<256x128xf32>
    %19 = arith.mulf %16, %18 : vector<256x128xf32>
    %cst_14 = arith.constant dense<0.000000e+00> : vector<256xf32>
    %20 = vector.multi_reduction <add>, %19, %cst_14 [1] : vector<256x128xf32> to vector<256xf32>
    %21 = vector.shape_cast %20 : vector<256xf32> to vector<256x1xf32>
    %c0_15 = arith.constant 0 : index
    %c0_16 = arith.constant 0 : index
    %22 = vector.load %arg7[%c0_15, %c0_16] : memref<1x1xf32, #tpu.memory_space<vmem>>, vector<1x1xf32>
    %23 = vector.broadcast %22 : vector<1x1xf32> to vector<256x1xf32>
    %24 = arith.addf %21, %23 : vector<256x1xf32>
    %c0_17 = arith.constant 0 : index
    %c0_18 = arith.constant 0 : index
    %25 = vector.load %arg8[%c0_17, %c0_18] : memref<256x1xf32, #tpu.memory_space<vmem>>, vector<256x1xf32>
    tpu.vector_store %arg8[%c0_17, %c0_18], %24 {strides = array<i32>} : memref<256x1xf32, #tpu.memory_space<vmem>>, vector<256x1xf32>,
    return
  }
  func.func @transform_0(%arg0: i32) -> (i32, i32) {
    %c0_i32 = arith.constant 0 : i32
    %c0_i32_0 = arith.constant 0 : i32
    return %arg0, %c0_i32 : i32, i32
  }
  func.func @transform_1(%arg0: i32) -> (i32, i32) {
    %c0_i32 = arith.constant 0 : i32
    %c0_i32_0 = arith.constant 0 : i32
    %c0_i32_1 = arith.constant 0 : i32
    return %c0_i32, %c0_i32_0 : i32, i32
  }
  func.func @transform_2(%arg0: i32) -> (i32, i32) {
    %c0_i32 = arith.constant 0 : i32
    %c0_i32_0 = arith.constant 0 : i32
    %c0_i32_1 = arith.constant 0 : i32
    return %c0_i32, %c0_i32_0 : i32, i32
  }
  func.func @transform_3(%arg0: i32) -> (i32, i32) {
    %c0_i32 = arith.constant 0 : i32
    %c0_i32_0 = arith.constant 0 : i32
    %c0_i32_1 = arith.constant 0 : i32
    return %c0_i32, %c0_i32_0 : i32, i32
  }
  func.func @transform_4(%arg0: i32) -> (i32, i32) {
    %c0_i32 = arith.constant 0 : i32
    %c0_i32_0 = arith.constant 0 : i32
    %c0_i32_1 = arith.constant 0 : i32
    return %c0_i32, %c0_i32_0 : i32, i32
  }
  func.func @transform_5(%arg0: i32) -> (i32, i32) {
    %c0_i32 = arith.constant 0 : i32
    %c0_i32_0 = arith.constant 0 : i32
    %c0_i32_1 = arith.constant 0 : i32
    return %c0_i32, %c0_i32_0 : i32, i32
  }
  func.func @transform_6(%arg0: i32) -> (i32, i32) {
    %c0_i32 = arith.constant 0 : i32
    %c0_i32_0 = arith.constant 0 : i32
    %c0_i32_1 = arith.constant 0 : i32
    return %c0_i32, %c0_i32_0 : i32, i32
  }
  func.func @transform_7(%arg0: i32) -> (i32, i32) {
    %c0_i32 = arith.constant 0 : i32
    %c0_i32_0 = arith.constant 0 : i32
    return %arg0, %c0_i32 : i32, i32
  }
}

</mosaic_0001>

<bundles_post_ra>
// kernel: tpu_custom_call.1
= control target key start
LH: loop header
LB: loop body
LE: loop exit
PB: predicated region body
PF: predicated region fallthrough
CT: control target
= control target key end

     0   :  { %vm160_vm0 = vcmask 1045504   ;;  %vm161_vm1 = vcmask 1046528   ;;  %v1157_v1 = vmov 65535   ;;  %v1158_v3 = vmov 0   ;;  %s1697_s1 = inlined_call_operand.vmem [shape: bf16[29,256], index: 1, kind: input, shape index: {}]   ;;  %s1698_s0 = inlined_call_operand.vmem [shape: f32[256,29], index: 0, kind: input, shape index: {}]   ;;  %s1699_s3 = inlined_call_operand.vmem [shape: bf16[256,128], index: 3, kind: input, shape index: {}]   ;;  %s1700_s2 = inlined_call_operand.vmem [shape: f32[1,256], index: 2, kind: input, shape index: {}]   ;;  %s1701_s4 = inlined_call_operand.vmem [shape: f32[1,128], index: 4, kind: input, shape index: {}]   ;;  %s1702_s5 = inlined_call_operand.vmem [shape: f32[1,128], index: 5, kind: input, shape index: {}]   ;;  %s1703_s6 = inlined_call_operand.<no memory space> [shape: f32[1,1], index: 6, kind: input, shape index: {}]   ;;  %s1704_s7 = inlined_call_operand.vmem [shape: f32[256,1], index: 7, kind: output, shape index: {}]  }
   0x1   :  { %v1135_v0 = vld [vmem:[%s1697_s1 + $0x4] ss:$8 sps:$4 sm:$0xff]   ;;  %v162_v2 = vsel %vm160_vm0, 4294967295, %v1157_v1  ;;  %202 = vmatprep.mubr.bf16.mxu0 %v1158_v3  ;;  %v1137_v4 = vld [vmem:[%s1697_s1] ss:$8 sps:$4 sm:$0xff]   ;;  %vm111_vm2 = vcmask 236544  }
   0x2   :  { %v163_v5 = vsel %vm161_vm1, %v162_v2, 0  ;;  %170 = vmatprep.subr.bf16.mxu0 %v1135_v0  ;;  %v1138_v6 = vld [vmem:[%s1697_s1 + $0x14] ss:$8 sps:$4 sm:$0x7f]   ;;  %v29_v8 = vld [vmem:[%s1698_s0] sm:$0xff]  ;;  %v30_v9 = vld [vmem:[%s1698_s0 + $0x8] sm:$0xff] }
   0x3   :  { %v1140_v7 = vld [vmem:[%s1697_s1 + $0x10] ss:$8 sps:$4 sm:$0x7f]   ;;  %171 = vmatpush1.bf16.msra.mxu0 %v1137_v4  ;;  %v168_v10 = vand.u32 %v1138_v6, %v163_v5  ;;  %v61_v12 = vpack.c.bf16 %v30_v9, %v29_v8  ;;  %v1141_v16 = vld [vmem:[%s1699_s3 + $0x40] sm:$0xff]   ;;  %v1143_v18 = vld [vmem:[%s1699_s3 + $0x48] sm:$0xff]   ;;  %vm929_vm3 = vcmask 7168  }
   0x4   :  { %v165_v11 = vand.u32 %v1140_v7, %v163_v5  ;;  %v31_v13 = vld [vmem:[%s1698_s0 + $0x10] sm:$0xff]  ;;  %v32_v14 = vld [vmem:[%s1698_s0 + $0x18] sm:$0xff]  ;;  %v1142_v17 = vld [vmem:[%s1699_s3] sm:$0xff]   ;;  %1117 = vmatprep.subr.bf16.mxu1 %v1141_v16 }
   0x5   :  { %172 = vmatprep.subr.bf16.mxu0 %v168_v10  ;;  %v62_v15 = vpack.c.bf16 %v32_v14, %v31_v13  ;;  %v33_v19 = vld [vmem:[%s1698_s0 + $0x20] sm:$0xff]  ;;  %v1144_v20 = vld [vmem:[%s1699_s3 + $0x8] sm:$0xff]   ;;  %1125 = vmatpush3.bf16.msra.mxu1 %v1142_v17  ;;  %v1145_v21 = vld [vmem:[%s1699_s3 + $0x50] sm:$0xff]  }
   0x6   :  { %v34_v22 = vld [vmem:[%s1698_s0 + $0x28] sm:$0xff]  ;;  %1118 = vmatprep.subr.bf16.mxu1 %v1143_v18  ;;  %v1146_v23 = vld [vmem:[%s1699_s3 + $0x10] sm:$0xff]   ;;  %v1147_v25 = vld [vmem:[%s1699_s3 + $0x58] sm:$0xff]  }
   0x7   :  { %173 = vmatpush1.bf16.msra.mxu0 %v165_v11  ;;  %v63_v24 = vpack.c.bf16 %v34_v22, %v33_v19  ;;  %v1148_v26 = vld [vmem:[%s1699_s3 + $0x18] sm:$0xff]   ;;  %v1149_v27 = vld [vmem:[%s1699_s3 + $0x60] sm:$0xff]   ;;  %v35_v28 = vld [vmem:[%s1698_s0 + $0x30] sm:$0xff]  ;;  %v83_v11 = vlaneseq }
   0x8   :  { %1005 = vmatprep.subr.bf16.mxu0 %v1141_v16  ;;  %v36_v29 = vld [vmem:[%s1698_s0 + $0x38] sm:$0xff]  ;;  %v1150_v30 = vld [vmem:[%s1699_s3 + $0x20] sm:$0xff]   ;;  %v1151_v32 = vld [vmem:[%s1699_s3 + $0x68] sm:$0xff]  }
   0x9   :  { %1126 = vmatpush3.bf16.msra.mxu1 %v1144_v20  ;;  %v64_v31 = vpack.c.bf16 %v36_v29, %v35_v28  ;;  %v37_v33 = vld [vmem:[%s1698_s0 + $0x40] sm:$0xff]  ;;  %v38_v34 = vld [vmem:[%s1698_s0 + $0x48] sm:$0xff]  ;;  %v39_v36 = vld [vmem:[%s1698_s0 + $0x50] sm:$0xff] }
   0xa   :  { %970 = vmatmul.mubr.msk.bf16.vlgmr.msra.gmra.mrb[0].mxu0 %vm111_vm2, %v61_v12  ;;  %1119 = vmatprep.subr.bf16.mxu1 %v1145_v21  ;;  %v65_v35 = vpack.c.bf16 %v38_v34, %v37_v33  ;;  %v40_v37 = vld [vmem:[%s1698_s0 + $0x58] sm:$0xff]  ;;  %v41_v39 = vld [vmem:[%s1698_s0 + $0x60] sm:$0xff]  ;;  %v42_v40 = vld [vmem:[%s1698_s0 + $0x68] sm:$0xff]  ;;  %v84_v12 = vshrl.u32 %v83_v11, 7 }
   0xb   :  { %212 = vmatprep.mubr.bf16.mxu0 %v1158_v3  ;;  %1006 = vmatpush3.bf16.msra.mxu0 %v1142_v17  ;;  %v66_v38 = vpack.c.bf16 %v40_v37, %v39_v36  ;;  %v67_v41 = vpack.c.bf16 %v42_v40, %v41_v39  ;;  %v43_v42 = vld [vmem:[%s1698_s0 + $0x70] sm:$0xff]  ;;  %v44_v43 = vld [vmem:[%s1698_s0 + $0x78] sm:$0xff]  ;;  %v45_v45 = vld [vmem:[%s1698_s0 + $0x80] sm:$0xff] }
   0xc   :  { %1007 = vmatprep.subr.bf16.mxu0 %v1143_v18  ;;  %v68_v44 = vpack.c.bf16 %v44_v43, %v43_v42  ;;  %v46_v46 = vld [vmem:[%s1698_s0 + $0x88] sm:$0xff]  ;;  %v47_v48 = vld [vmem:[%s1698_s0 + $0x90] sm:$0xff]  ;;  %v48_v49 = vld [vmem:[%s1698_s0 + $0x98] sm:$0xff]  ;;  %v85_v13 = vsub.s32 0, %v84_v12 }
   0xd   :  { %1127 = vmatpush3.bf16.msra.mxu1 %v1146_v23  ;;  %v69_v47 = vpack.c.bf16 %v46_v46, %v45_v45  ;;  %v70_v50 = vpack.c.bf16 %v48_v49, %v47_v48  ;;  %v49_v51 = vld [vmem:[%s1698_s0 + $0xa0] sm:$0xff]  ;;  %v50_v52 = vld [vmem:[%s1698_s0 + $0xa8] sm:$0xff]  ;;  %v51_v54 = vld [vmem:[%s1698_s0 + $0xb0] sm:$0xff] }
   0xe   :  { %1120 = vmatprep.subr.bf16.mxu1 %v1147_v25  ;;  %v71_v53 = vpack.c.bf16 %v50_v52, %v49_v51  ;;  %v52_v55 = vld [vmem:[%s1698_s0 + $0xb8] sm:$0xff]  ;;  %v1152_v56 = vld [vmem:[%s1699_s3 + $0x28] sm:$0xff]   ;;  %v1153_v58 = vld [vmem:[%s1699_s3 + $0x70] sm:$0xff]  }
   0xf   :  { %1008 = vmatpush3.bf16.msra.mxu0 %v1144_v20  ;;  %v72_v57 = vpack.c.bf16 %v52_v55, %v51_v54  ;;  %v1154_v59 = vld [vmem:[%s1699_s3 + $0x30] sm:$0xff]   ;;  %v1155_v60 = vld [vmem:[%s1699_s3 + $0x78] sm:$0xff]   ;;  %v53_v61 = vld [vmem:[%s1698_s0 + $0xc0] sm:$0xff] }
  0x10   :  { %1009 = vmatprep.subr.bf16.mxu0 %v1145_v21  ;;  %v54_v62 = vld [vmem:[%s1698_s0 + $0xc8] sm:$0xff]  ;;  %v1156_v63 = vld [vmem:[%s1699_s3 + $0x38] sm:$0xff]   ;;  %v55_v1 = vld [vmem:[%s1698_s0 + $0xd0] sm:$0xff] }
  0x11   :  { %1128 = vmatpush3.bf16.msra.mxu1 %v1148_v26  ;;  %v73_v0 = vpack.c.bf16 %v54_v62, %v53_v61  ;;  %v56_v2 = vld [vmem:[%s1698_s0 + $0xd8] sm:$0xff]  ;;  %v57_v5 = vld [vmem:[%s1698_s0 + $0xe0] sm:$0xff]  ;;  %v58_v6 = vld [vmem:[%s1698_s0 + $0xe8] sm:$0xff] }
  0x12   :  { %971 = vmatmul.mubr.msk.bf16.gmra.mrb[4].mxu0 %vm111_vm2, %v62_v15  ;;  %1121 = vmatprep.subr.bf16.mxu1 %v1149_v27  ;;  %v74_v4 = vpack.c.bf16 %v56_v2, %v55_v1  ;;  %v75_v7 = vpack.c.bf16 %v58_v6, %v57_v5  ;;  %v59_v8 = vld [vmem:[%s1698_s0 + $0xf0] sm:$0xff]  ;;  %v60_v9 = vld [vmem:[%s1698_s0 + $0xf8] sm:$0xff]  ;;  %v81_v14 = vld [vmem:[%s1700_s2] sm:$0x3]  ;;  %v89_v15 = vsub.s32 1, %v84_v12 }
  0x13   :  { %222 = vmatprep.mubr.bf16.mxu0 %v1158_v3  ;;  %1010 = vmatpush3.bf16.msra.mxu0 %v1146_v23  ;;  %v76_v10 = vpack.c.bf16 %v60_v9, %v59_v8 }
  0x14   :  { %1011 = vmatprep.subr.bf16.mxu0 %v1147_v25  ;;  %v1392_v16 = vrot.slane %v81_v14, %v89_v15 }
  0x15   :  { %1129 = vmatpush3.bf16.msra.mxu1 %v1150_v30 }
  0x16   :  { %1122 = vmatprep.subr.bf16.mxu1 %v1151_v32 }
  0x17   :  { %1012 = vmatpush3.bf16.msra.mxu0 %v1148_v26 }
  0x18   :  { %1013 = vmatprep.subr.bf16.mxu0 %v1149_v27 }
  0x19   :  { %1130 = vmatpush3.bf16.msra.mxu1 %v1152_v56 }
  0x1a   :  { %972 = vmatmul.mubr.msk.bf16.gmra.mrb[8].mxu0 %vm111_vm2, %v63_v24  ;;  %1123 = vmatprep.subr.bf16.mxu1 %v1153_v58 }
  0x1b   :  { %232 = vmatprep.mubr.bf16.mxu0 %v1158_v3  ;;  %1014 = vmatpush3.bf16.msra.mxu0 %v1150_v30 }
  0x1c   :  { %1015 = vmatprep.subr.bf16.mxu0 %v1151_v32 }
  0x1d   :  { %1131 = vmatpush3.bf16.msra.mxu1 %v1154_v59 }
  0x1e   :  { %1124 = vmatprep.subr.bf16.mxu1 %v1155_v60 }
  0x1f   :  { %1016 = vmatpush3.bf16.msra.mxu0 %v1152_v56 }
  0x20   :  { %1017 = vmatprep.subr.bf16.mxu0 %v1153_v58 }
  0x21   :  { %1132 = vmatpush3.bf16.msra.mxu1 %v1156_v63 }
  0x22   :  { %973 = vmatmul.mubr.msk.bf16.gmra.mrb[12].mxu0 %vm111_vm2, %v64_v31 }
  0x23   :  { %242 = vmatprep.mubr.bf16.mxu0 %v1158_v3  ;;  %1018 = vmatpush3.bf16.msra.mxu0 %v1154_v59 }
  0x24   :  { %1019 = vmatprep.subr.bf16.mxu0 %v1155_v60 }
  0x27   :  { %1020 = vmatpush3.bf16.msra.mxu0 %v1156_v63 }
  0x2a   :  { %974 = vmatmul.mubr.msk.bf16.gmra.mrb[16].mxu0 %vm111_vm2, %v65_v35 }
  0x2b   :  { %252 = vmatprep.mubr.bf16.mxu0 %v1158_v3 }
  0x32   :  { %975 = vmatmul.mubr.msk.bf16.gmra.mrb[20].mxu0 %vm111_vm2, %v66_v38 }
  0x33   :  { %262 = vmatprep.mubr.bf16.mxu0 %v1158_v3 }
  0x3a   :  { %976 = vmatmul.mubr.msk.bf16.gmra.mrb[24].mxu0 %vm111_vm2, %v67_v41 }
  0x3b   :  { %272 = vmatprep.mubr.bf16.mxu0 %v1158_v3 }
  0x42   :  { %977 = vmatmul.mubr.msk.bf16.gmra.mrb[28].mxu0 %vm111_vm2, %v68_v44 }
  0x43   :  { %282 = vmatprep.mubr.bf16.mxu0 %v1158_v3 }
  0x4a   :  { %978 = vmatmul.mubr.msk.bf16.gmra.mrb[32].mxu0 %vm111_vm2, %v69_v47 }
  0x4b   :  { %292 = vmatprep.mubr.bf16.mxu0 %v1158_v3 }
  0x52   :  { %979 = vmatmul.mubr.msk.bf16.gmra.mrb[36].mxu0 %vm111_vm2, %v70_v50 }
  0x53   :  { %302 = vmatprep.mubr.bf16.mxu0 %v1158_v3 }
  0x5a   :  { %980 = vmatmul.mubr.msk.bf16.gmra.mrb[40].mxu0 %vm111_vm2, %v71_v53 }
  0x5b   :  { %312 = vmatprep.mubr.bf16.mxu0 %v1158_v3 }
  0x62   :  { %981 = vmatmul.mubr.msk.bf16.gmra.mrb[44].mxu0 %vm111_vm2, %v72_v57 }
  0x63   :  { %322 = vmatprep.mubr.bf16.mxu0 %v1158_v3 }
  0x6a   :  { %982 = vmatmul.mubr.msk.bf16.gmra.mrb[48].mxu0 %vm111_vm2, %v73_v0 }
  0x6b   :  { %332 = vmatprep.mubr.bf16.mxu0 %v1158_v3 }
  0x72   :  { %983 = vmatmul.mubr.msk.bf16.gmra.mrb[52].mxu0 %vm111_vm2, %v74_v4 }
  0x73   :  { %342 = vmatprep.mubr.bf16.mxu0 %v1158_v3 }
  0x7a   :  { %984 = vmatmul.mubr.msk.bf16.gmra.mrb[56].mxu0 %vm111_vm2, %v75_v7 }
  0x7b   :  { %352 = vmatprep.mubr.bf16.mxu0 %v1158_v3  ;;  %v1390_v3 = vrot.slane %v81_v14, %v85_v13 }
  0x82   :  { %985 = vmatmul.mubr.msk.bf16.gmra.mrb[60].mxu0 %vm111_vm2, %v76_v10 }
  0xdd   :  { %v204_v17 = vpop.f32.mrb[0].mxu0 }
  0xde   :  { %v205_v18 = vadd.f32 %v204_v17, %v1390_v3  ;;  %v206_v19 = vpop.f32.mrb[1].mxu0 }
  0xdf   :  { %v207_v20 = vadd.f32 %v206_v19, %v1392_v16  ;;  %v208_v21 = vpop.f32.mrb[2].mxu0 }
  0xe0   :  { %v209_v22 = vadd.f32 %v208_v21, %v1390_v3  ;;  %v210_v23 = vpop.f32.mrb[3].mxu0  ;;  %v363_v25 = vmax.f32 %v205_v18, 0.0 }
  0xe1   :  { %v211_v24 = vadd.f32 %v210_v23, %v1392_v16  ;;  %v364_v27 = vmax.f32 %v207_v20, 0.0 }
  0xe2   :  { %v365_v26 = vmax.f32 %v209_v22, 0.0 }
  0xe3   :  { %v366_v28 = vmax.f32 %v211_v24, 0.0 }
  0xe4   :  { %v427_v29 = vpack.c.bf16 %v365_v26, %v363_v25 }
  0xe5   :  { %v428_v30 = vpack.c.bf16 %v366_v28, %v364_v27  ;;  %v214_v31 = vpop.f32.mrb[4].mxu0 }
  0xe6   :  { %v215_v32 = vadd.f32 %v214_v31, %v1390_v3  ;;  %v216_v33 = vpop.f32.mrb[5].mxu0 }
  0xe7   :  { %v217_v34 = vadd.f32 %v216_v33, %v1392_v16  ;;  %v218_v35 = vpop.f32.mrb[6].mxu0  ;;  %626 = vmatprep.mubr.bf16.mxu0 %v428_v30 }
  0xe8   :  { %v219_v36 = vadd.f32 %v218_v35, %v1390_v3  ;;  %v220_v37 = vpop.f32.mrb[7].mxu0  ;;  %627 = vmatmul.mubr.bf16.vlgmr.msra.gmra.mrb[64].mxu0 %v427_v29  ;;  %v367_v39 = vmax.f32 %v215_v32, 0.0 }
  0xe9   :  { %v221_v38 = vadd.f32 %v220_v37, %v1392_v16  ;;  %v368_v41 = vmax.f32 %v217_v34, 0.0 }
  0xea   :  { %v369_v40 = vmax.f32 %v219_v36, 0.0 }
  0xeb   :  { %v370_v42 = vmax.f32 %v221_v38, 0.0 }
  0xec   :  { %v429_v43 = vpack.c.bf16 %v369_v40, %v367_v39 }
  0xed   :  { %v224_v44 = vpop.f32.mrb[8].mxu0  ;;  %v430_v45 = vpack.c.bf16 %v370_v42, %v368_v41 }
  0xee   :  { %v225_v46 = vadd.f32 %v224_v44, %v1390_v3  ;;  %v226_v47 = vpop.f32.mrb[9].mxu0 }
  0xef   :  { %v227_v48 = vadd.f32 %v226_v47, %v1392_v16  ;;  %v228_v49 = vpop.f32.mrb[10].mxu0  ;;  %634 = vmatprep.mubr.bf16.mxu1 %v430_v45 }
  0xf0   :  { %v229_v50 = vadd.f32 %v228_v49, %v1390_v3  ;;  %v230_v51 = vpop.f32.mrb[11].mxu0  ;;  %635 = vmatmul.mubr.bf16.vlgmr.msra.gmra.mrb[0].mxu1 %v429_v43  ;;  %v371_v53 = vmax.f32 %v225_v46, 0.0 }
  0xf1   :  { %v231_v52 = vadd.f32 %v230_v51, %v1392_v16  ;;  %v372_v55 = vmax.f32 %v227_v48, 0.0 }
  0xf2   :  { %v373_v54 = vmax.f32 %v229_v50, 0.0 }
  0xf3   :  { %v374_v56 = vmax.f32 %v231_v52, 0.0 }
  0xf4   :  { %v431_v57 = vpack.c.bf16 %v373_v54, %v371_v53 }
  0xf5   :  { %v432_v58 = vpack.c.bf16 %v374_v56, %v372_v55  ;;  %v234_v59 = vpop.f32.mrb[12].mxu0 }
  0xf6   :  { %v235_v60 = vadd.f32 %v234_v59, %v1390_v3  ;;  %v236_v61 = vpop.f32.mrb[13].mxu0 }
  0xf7   :  { %v237_v62 = vadd.f32 %v236_v61, %v1392_v16  ;;  %v238_v63 = vpop.f32.mrb[14].mxu0  ;;  %642 = vmatprep.mubr.bf16.mxu1 %v432_v58 }
  0xf8   :  { %v239_v0 = vadd.f32 %v238_v63, %v1390_v3  ;;  %v240_v1 = vpop.f32.mrb[15].mxu0  ;;  %643 = vmatmul.mubr.bf16.gmra.mrb[4].mxu1 %v431_v57  ;;  %v375_v4 = vmax.f32 %v235_v60, 0.0 }
  0xf9   :  { %v241_v2 = vadd.f32 %v240_v1, %v1392_v16  ;;  %v376_v6 = vmax.f32 %v237_v62, 0.0 }
  0xfa   :  { %v377_v5 = vmax.f32 %v239_v0, 0.0 }
  0xfb   :  { %v378_v7 = vmax.f32 %v241_v2, 0.0 }
  0xfc   :  { %v433_v8 = vpack.c.bf16 %v377_v5, %v375_v4 }
  0xfd   :  { %v434_v9 = vpack.c.bf16 %v378_v7, %v376_v6  ;;  %v244_v10 = vpop.f32.mrb[16].mxu0 }
  0xfe   :  { %v245_v11 = vadd.f32 %v244_v10, %v1390_v3  ;;  %v246_v12 = vpop.f32.mrb[17].mxu0 }
  0xff   :  { %v247_v13 = vadd.f32 %v246_v12, %v1392_v16  ;;  %v248_v14 = vpop.f32.mrb[18].mxu0  ;;  %650 = vmatprep.mubr.bf16.mxu1 %v434_v9 }
 0x100   :  { %v249_v15 = vadd.f32 %v248_v14, %v1390_v3  ;;  %v250_v17 = vpop.f32.mrb[19].mxu0  ;;  %651 = vmatmul.mubr.bf16.gmra.mrb[8].mxu1 %v433_v8  ;;  %v379_v19 = vmax.f32 %v245_v11, 0.0 }
 0x101   :  { %v251_v18 = vadd.f32 %v250_v17, %v1392_v16  ;;  %v380_v21 = vmax.f32 %v247_v13, 0.0 }
 0x102   :  { %v381_v20 = vmax.f32 %v249_v15, 0.0 }
 0x103   :  { %v382_v22 = vmax.f32 %v251_v18, 0.0 }
 0x104   :  { %v435_v23 = vpack.c.bf16 %v381_v20, %v379_v19 }
 0x105   :  { %v436_v24 = vpack.c.bf16 %v382_v22, %v380_v21  ;;  %v254_v25 = vpop.f32.mrb[20].mxu0 }
 0x106   :  { %v255_v26 = vadd.f32 %v254_v25, %v1390_v3  ;;  %v256_v27 = vpop.f32.mrb[21].mxu0 }
 0x107   :  { %v257_v28 = vadd.f32 %v256_v27, %v1392_v16  ;;  %v258_v29 = vpop.f32.mrb[22].mxu0  ;;  %658 = vmatprep.mubr.bf16.mxu1 %v436_v24 }
 0x108   :  { %v259_v30 = vadd.f32 %v258_v29, %v1390_v3  ;;  %v260_v31 = vpop.f32.mrb[23].mxu0  ;;  %659 = vmatmul.mubr.bf16.gmra.mrb[12].mxu1 %v435_v23  ;;  %v383_v33 = vmax.f32 %v255_v26, 0.0 }
 0x109   :  { %v261_v32 = vadd.f32 %v260_v31, %v1392_v16  ;;  %v384_v35 = vmax.f32 %v257_v28, 0.0 }
 0x10a   :  { %v385_v34 = vmax.f32 %v259_v30, 0.0 }
 0x10b   :  { %v386_v36 = vmax.f32 %v261_v32, 0.0 }
 0x10c   :  { %v437_v37 = vpack.c.bf16 %v385_v34, %v383_v33 }
 0x10d   :  { %v438_v38 = vpack.c.bf16 %v386_v36, %v384_v35  ;;  %v264_v39 = vpop.f32.mrb[24].mxu0 }
 0x10e   :  { %v265_v40 = vadd.f32 %v264_v39, %v1390_v3  ;;  %v266_v41 = vpop.f32.mrb[25].mxu0 }
 0x10f   :  { %v267_v42 = vadd.f32 %v266_v41, %v1392_v16  ;;  %v268_v43 = vpop.f32.mrb[26].mxu0  ;;  %666 = vmatprep.mubr.bf16.mxu1 %v438_v38 }
 0x110   :  { %v269_v44 = vadd.f32 %v268_v43, %v1390_v3  ;;  %v270_v45 = vpop.f32.mrb[27].mxu0  ;;  %667 = vmatmul.mubr.bf16.gmra.mrb[16].mxu1 %v437_v37  ;;  %v387_v47 = vmax.f32 %v265_v40, 0.0 }
 0x111   :  { %v271_v46 = vadd.f32 %v270_v45, %v1392_v16  ;;  %v388_v49 = vmax.f32 %v267_v42, 0.0 }
 0x112   :  { %v389_v48 = vmax.f32 %v269_v44, 0.0 }
 0x113   :  { %v390_v50 = vmax.f32 %v271_v46, 0.0 }
 0x114   :  { %v439_v51 = vpack.c.bf16 %v389_v48, %v387_v47 }
 0x115   :  { %v440_v52 = vpack.c.bf16 %v390_v50, %v388_v49  ;;  %v274_v53 = vpop.f32.mrb[28].mxu0 }
 0x116   :  { %v275_v54 = vadd.f32 %v274_v53, %v1390_v3  ;;  %v276_v55 = vpop.f32.mrb[29].mxu0 }
 0x117   :  { %v277_v56 = vadd.f32 %v276_v55, %v1392_v16  ;;  %v278_v57 = vpop.f32.mrb[30].mxu0  ;;  %674 = vmatprep.mubr.bf16.mxu1 %v440_v52 }
 0x118   :  { %v279_v58 = vadd.f32 %v278_v57, %v1390_v3  ;;  %v280_v59 = vpop.f32.mrb[31].mxu0  ;;  %675 = vmatmul.mubr.bf16.gmra.mrb[20].mxu1 %v439_v51  ;;  %v391_v61 = vmax.f32 %v275_v54, 0.0 }
 0x119   :  { %v281_v60 = vadd.f32 %v280_v59, %v1392_v16  ;;  %v392_v63 = vmax.f32 %v277_v56, 0.0 }
 0x11a   :  { %v393_v62 = vmax.f32 %v279_v58, 0.0 }
 0x11b   :  { %v394_v0 = vmax.f32 %v281_v60, 0.0 }
 0x11c   :  { %v441_v1 = vpack.c.bf16 %v393_v62, %v391_v61 }
 0x11d   :  { %v442_v2 = vpack.c.bf16 %v394_v0, %v392_v63  ;;  %v284_v4 = vpop.f32.mrb[32].mxu0 }
 0x11e   :  { %v285_v5 = vadd.f32 %v284_v4, %v1390_v3  ;;  %v286_v6 = vpop.f32.mrb[33].mxu0 }
 0x11f   :  { %v287_v7 = vadd.f32 %v286_v6, %v1392_v16  ;;  %v288_v8 = vpop.f32.mrb[34].mxu0  ;;  %682 = vmatprep.mubr.bf16.mxu1 %v442_v2 }
 0x120   :  { %v289_v9 = vadd.f32 %v288_v8, %v1390_v3  ;;  %v290_v10 = vpop.f32.mrb[35].mxu0  ;;  %683 = vmatmul.mubr.bf16.gmra.mrb[24].mxu1 %v441_v1  ;;  %v395_v12 = vmax.f32 %v285_v5, 0.0 }
 0x121   :  { %v291_v11 = vadd.f32 %v290_v10, %v1392_v16  ;;  %v396_v14 = vmax.f32 %v287_v7, 0.0 }
 0x122   :  { %v397_v13 = vmax.f32 %v289_v9, 0.0 }
 0x123   :  { %v398_v15 = vmax.f32 %v291_v11, 0.0 }
 0x124   :  { %v443_v17 = vpack.c.bf16 %v397_v13, %v395_v12 }
 0x125   :  { %v444_v18 = vpack.c.bf16 %v398_v15, %v396_v14  ;;  %v294_v19 = vpop.f32.mrb[36].mxu0 }
 0x126   :  { %v295_v20 = vadd.f32 %v294_v19, %v1390_v3  ;;  %v296_v21 = vpop.f32.mrb[37].mxu0 }
 0x127   :  { %v297_v22 = vadd.f32 %v296_v21, %v1392_v16  ;;  %v298_v23 = vpop.f32.mrb[38].mxu0  ;;  %690 = vmatprep.mubr.bf16.mxu1 %v444_v18 }
 0x128   :  { %v299_v24 = vadd.f32 %v298_v23, %v1390_v3  ;;  %v300_v25 = vpop.f32.mrb[39].mxu0  ;;  %691 = vmatmul.mubr.bf16.gmra.mrb[28].mxu1 %v443_v17  ;;  %v399_v27 = vmax.f32 %v295_v20, 0.0 }
 0x129   :  { %v301_v26 = vadd.f32 %v300_v25, %v1392_v16  ;;  %v400_v29 = vmax.f32 %v297_v22, 0.0 }
 0x12a   :  { %v401_v28 = vmax.f32 %v299_v24, 0.0 }
 0x12b   :  { %v402_v30 = vmax.f32 %v301_v26, 0.0 }
 0x12c   :  { %v445_v31 = vpack.c.bf16 %v401_v28, %v399_v27 }
 0x12d   :  { %v446_v32 = vpack.c.bf16 %v402_v30, %v400_v29  ;;  %v304_v33 = vpop.f32.mrb[40].mxu0 }
 0x12e   :  { %v305_v34 = vadd.f32 %v304_v33, %v1390_v3  ;;  %v306_v35 = vpop.f32.mrb[41].mxu0 }
 0x12f   :  { %v307_v36 = vadd.f32 %v306_v35, %v1392_v16  ;;  %v308_v37 = vpop.f32.mrb[42].mxu0  ;;  %698 = vmatprep.mubr.bf16.mxu1 %v446_v32 }
 0x130   :  { %v309_v38 = vadd.f32 %v308_v37, %v1390_v3  ;;  %v310_v39 = vpop.f32.mrb[43].mxu0  ;;  %699 = vmatmul.mubr.bf16.gmra.mrb[32].mxu1 %v445_v31  ;;  %v403_v41 = vmax.f32 %v305_v34, 0.0 }
 0x131   :  { %v311_v40 = vadd.f32 %v310_v39, %v1392_v16  ;;  %v404_v43 = vmax.f32 %v307_v36, 0.0 }
 0x132   :  { %v405_v42 = vmax.f32 %v309_v38, 0.0 }
 0x133   :  { %v406_v44 = vmax.f32 %v311_v40, 0.0 }
 0x134   :  { %v447_v45 = vpack.c.bf16 %v405_v42, %v403_v41 }
 0x135   :  { %v448_v46 = vpack.c.bf16 %v406_v44, %v404_v43  ;;  %v314_v47 = vpop.f32.mrb[44].mxu0 }
 0x136   :  { %v315_v48 = vadd.f32 %v314_v47, %v1390_v3  ;;  %v316_v49 = vpop.f32.mrb[45].mxu0 }
 0x137   :  { %v317_v50 = vadd.f32 %v316_v49, %v1392_v16  ;;  %v318_v51 = vpop.f32.mrb[46].mxu0  ;;  %706 = vmatprep.mubr.bf16.mxu1 %v448_v46 }
 0x138   :  { %v319_v52 = vadd.f32 %v318_v51, %v1390_v3  ;;  %v320_v53 = vpop.f32.mrb[47].mxu0  ;;  %707 = vmatmul.mubr.bf16.gmra.mrb[36].mxu1 %v447_v45  ;;  %v407_v55 = vmax.f32 %v315_v48, 0.0 }
 0x139   :  { %v321_v54 = vadd.f32 %v320_v53, %v1392_v16  ;;  %v408_v57 = vmax.f32 %v317_v50, 0.0 }
 0x13a   :  { %v409_v56 = vmax.f32 %v319_v52, 0.0 }
 0x13b   :  { %v410_v58 = vmax.f32 %v321_v54, 0.0 }
 0x13c   :  { %v449_v59 = vpack.c.bf16 %v409_v56, %v407_v55 }
 0x13d   :  { %v450_v60 = vpack.c.bf16 %v410_v58, %v408_v57  ;;  %v324_v61 = vpop.f32.mrb[48].mxu0  ;;  %v1461_v57 = vld [vmem:[%s1701_s4] ss:$0 sm:$0xff] }
 0x13e   :  { %v325_v62 = vadd.f32 %v324_v61, %v1390_v3  ;;  %v326_v63 = vpop.f32.mrb[49].mxu0  ;;  %v1467_v61 = vld [vmem:[%s1702_s5] ss:$0 sm:$0xff] }
 0x13f   :  { %v327_v0 = vadd.f32 %v326_v63, %v1392_v16  ;;  %v328_v1 = vpop.f32.mrb[50].mxu0  ;;  %714 = vmatprep.mubr.bf16.mxu1 %v450_v60 }
 0x140   :  { %v329_v2 = vadd.f32 %v328_v1, %v1390_v3  ;;  %v330_v4 = vpop.f32.mrb[51].mxu0  ;;  %715 = vmatmul.mubr.bf16.gmra.mrb[40].mxu1 %v449_v59  ;;  %v411_v6 = vmax.f32 %v325_v62, 0.0  ;;  %v12_v62 = vstv %s1703_s6 }
 0x141   :  { %v331_v5 = vadd.f32 %v330_v4, %v1392_v16  ;;  %v412_v8 = vmax.f32 %v327_v0, 0.0  ;;  %13 = vst [vmem:[#allocation2] sm:$0x1] %v12_v62 }
 0x142   :  { %v413_v7 = vmax.f32 %v329_v2, 0.0 }
 0x143   :  { %v414_v9 = vmax.f32 %v331_v5, 0.0 }
 0x144   :  { %v451_v10 = vpack.c.bf16 %v413_v7, %v411_v6 }
 0x145   :  { %v452_v11 = vpack.c.bf16 %v414_v9, %v412_v8  ;;  %v334_v12 = vpop.f32.mrb[52].mxu0 }
 0x146   :  { %v335_v13 = vadd.f32 %v334_v12, %v1390_v3  ;;  %v336_v14 = vpop.f32.mrb[53].mxu0 }
 0x147   :  { %v337_v15 = vadd.f32 %v336_v14, %v1392_v16  ;;  %v338_v17 = vpop.f32.mrb[54].mxu0  ;;  %722 = vmatprep.mubr.bf16.mxu1 %v452_v11 }
 0x148   :  { %v339_v18 = vadd.f32 %v338_v17, %v1390_v3  ;;  %v340_v19 = vpop.f32.mrb[55].mxu0  ;;  %723 = vmatmul.mubr.bf16.gmra.mrb[44].mxu1 %v451_v10  ;;  %v415_v21 = vmax.f32 %v335_v13, 0.0 }
 0x149   :  { %v341_v20 = vadd.f32 %v340_v19, %v1392_v16  ;;  %v416_v23 = vmax.f32 %v337_v15, 0.0 }
 0x14a   :  { %v417_v22 = vmax.f32 %v339_v18, 0.0 }
 0x14b   :  { %v418_v24 = vmax.f32 %v341_v20, 0.0 }
 0x14c   :  { %v453_v25 = vpack.c.bf16 %v417_v22, %v415_v21 }
 0x14d   :  { %v454_v26 = vpack.c.bf16 %v418_v24, %v416_v23  ;;  %v344_v27 = vpop.f32.mrb[56].mxu0 }
 0x14e   :  { %v345_v28 = vadd.f32 %v344_v27, %v1390_v3  ;;  %v346_v29 = vpop.f32.mrb[57].mxu0 }
 0x14f   :  { %v347_v30 = vadd.f32 %v346_v29, %v1392_v16  ;;  %v348_v31 = vpop.f32.mrb[58].mxu0  ;;  %730 = vmatprep.mubr.bf16.mxu1 %v454_v26 }
 0x150   :  { %v349_v32 = vadd.f32 %v348_v31, %v1390_v3  ;;  %v350_v33 = vpop.f32.mrb[59].mxu0  ;;  %731 = vmatmul.mubr.bf16.gmra.mrb[48].mxu1 %v453_v25  ;;  %v419_v35 = vmax.f32 %v345_v28, 0.0 }
 0x151   :  { %v351_v34 = vadd.f32 %v350_v33, %v1392_v16  ;;  %v420_v37 = vmax.f32 %v347_v30, 0.0 }
 0x152   :  { %v421_v36 = vmax.f32 %v349_v32, 0.0 }
 0x153   :  { %v422_v38 = vmax.f32 %v351_v34, 0.0 }
 0x154   :  { %v455_v39 = vpack.c.bf16 %v421_v36, %v419_v35 }
 0x155   :  { %v456_v40 = vpack.c.bf16 %v422_v38, %v420_v37  ;;  %v354_v41 = vpop.f32.mrb[60].mxu0 }
 0x156   :  { %v355_v42 = vadd.f32 %v354_v41, %v1390_v3  ;;  %v356_v43 = vpop.f32.mrb[61].mxu0 }
 0x157   :  { %v357_v44 = vadd.f32 %v356_v43, %v1392_v16  ;;  %v358_v45 = vpop.f32.mrb[62].mxu0  ;;  %738 = vmatprep.mubr.bf16.mxu1 %v456_v40 }
 0x158   :  { %v359_v46 = vadd.f32 %v358_v45, %v1390_v3  ;;  %v360_v47 = vpop.f32.mrb[63].mxu0  ;;  %739 = vmatmul.mubr.bf16.gmra.mrb[52].mxu1 %v455_v39  ;;  %v423_v49 = vmax.f32 %v355_v42, 0.0 }
 0x159   :  { %v361_v48 = vadd.f32 %v360_v47, %v1392_v16  ;;  %v424_v51 = vmax.f32 %v357_v44, 0.0 }
 0x15a   :  { %v425_v50 = vmax.f32 %v359_v46, 0.0 }
 0x15b   :  { %v426_v52 = vmax.f32 %v361_v48, 0.0 }
 0x15c   :  { %v457_v53 = vpack.c.bf16 %v425_v50, %v423_v49 }
 0x15d   :  { %v458_v54 = vpack.c.bf16 %v426_v52, %v424_v51 }
 0x15f   :  { %746 = vmatprep.mubr.bf16.mxu1 %v458_v54 }
 0x160   :  { %747 = vmatmul.mubr.bf16.gmra.mrb[56].mxu1 %v457_v53 }
 0x1bb   :  { %v1021_v55 = vpop.f32.mrb[64].mxu0 }
 0x1bc   :  { %v1022_v56 = vpop.f32.mrb[65].mxu0 }
 0x1bd   :  { %v1023_v3 = vadd.f32 %v1022_v56, %v1021_v55  ;;  %v1024_v58 = vpop.f32.mrb[66].mxu0 }
 0x1be   :  { %v1025_v59 = vpop.f32.mrb[67].mxu0 }
 0x1bf   :  { %v1026_v60 = vadd.f32 %v1025_v59, %v1024_v58  ;;  %v629_v16 = vadd.f32 %v1023_v3, %v1461_v57 }
 0x1c1   :  { %v632_v63 = vadd.f32 %v1026_v60, %v1461_v57  ;;  %v755_v0 = vmax.f32 %v629_v16, 0.0 }
 0x1c3   :  { %v756_v1 = vmax.f32 %v632_v63, 0.0  ;;  %v1027_v2 = vpop.f32.mrb[0].mxu1  ;;  %v794_v4 = vmul.f32 %v1467_v61, %v755_v0 }
 0x1c4   :  { %v1028_v5 = vpop.f32.mrb[1].mxu1 }
 0x1c5   :  { %v1029_v6 = vadd.f32 %v1028_v5, %v1027_v2  ;;  %v1030_v7 = vpop.f32.mrb[2].mxu1  ;;  %826 = vadd.xlane.f32.xlu0 %v794_v4  ;;  %v795_v10 = vmul.f32 %v1467_v61, %v756_v1 }
 0x1c6   :  { %v1031_v8 = vpop.f32.mrb[3].mxu1 }
 0x1c7   :  { %v1032_v9 = vadd.f32 %v1031_v8, %v1030_v7  ;;  %v637_v11 = vadd.f32 %v1029_v6, %v1461_v57 }
 0x1c9   :  { %v640_v12 = vadd.f32 %v1032_v9, %v1461_v57  ;;  %828 = vadd.xlane.f32.xlu0 %v795_v10  ;;  %v757_v13 = vmax.f32 %v637_v11, 0.0 }
 0x1cb   :  { %v758_v14 = vmax.f32 %v640_v12, 0.0  ;;  %v1033_v15 = vpop.f32.mrb[4].mxu1  ;;  %v796_v17 = vmul.f32 %v1467_v61, %v757_v13 }
 0x1cc   :  { %v1034_v18 = vpop.f32.mrb[5].mxu1 }
 0x1cd   :  { %v1035_v19 = vadd.f32 %v1034_v18, %v1033_v15  ;;  %v1036_v20 = vpop.f32.mrb[6].mxu1  ;;  %830 = vadd.xlane.f32.xlu1 %v796_v17  ;;  %v797_v24 = vmul.f32 %v1467_v61, %v758_v14 }
 0x1ce   :  { %v1037_v21 = vpop.f32.mrb[7].mxu1 }
 0x1cf   :  { %v645_v22 = vadd.f32 %v1035_v19, %v1461_v57  ;;  %v1038_v23 = vadd.f32 %v1037_v21, %v1036_v20 }
 0x1d1   :  { %v759_v25 = vmax.f32 %v645_v22, 0.0  ;;  %v648_v26 = vadd.f32 %v1038_v23, %v1461_v57  ;;  %832 = vadd.xlane.f32.xlu1 %v797_v24 }
 0x1d3   :  { %v760_v27 = vmax.f32 %v648_v26, 0.0  ;;  %v1039_v28 = vpop.f32.mrb[8].mxu1  ;;  %v798_v29 = vmul.f32 %v1467_v61, %v759_v25 }
 0x1d4   :  { %v1040_v30 = vpop.f32.mrb[9].mxu1 }
 0x1d5   :  { %v1041_v31 = vadd.f32 %v1040_v30, %v1039_v28  ;;  %v1042_v32 = vpop.f32.mrb[10].mxu1  ;;  %834 = vadd.xlane.f32.xlu0 %v798_v29  ;;  %v799_v33 = vmul.f32 %v1467_v61, %v760_v27 }
 0x1d6   :  { %v1043_v34 = vpop.f32.mrb[11].mxu1 }
 0x1d7   :  { %v653_v35 = vadd.f32 %v1041_v31, %v1461_v57  ;;  %v1044_v36 = vadd.f32 %v1043_v34, %v1042_v32  ;;  %836 = vadd.xlane.f32.xlu1 %v799_v33 }
 0x1d9   :  { %v761_v37 = vmax.f32 %v653_v35, 0.0  ;;  %v656_v38 = vadd.f32 %v1044_v36, %v1461_v57 }
 0x1db   :  { %v762_v39 = vmax.f32 %v656_v38, 0.0  ;;  %v1045_v40 = vpop.f32.mrb[12].mxu1  ;;  %v800_v41 = vmul.f32 %v1467_v61, %v761_v37 }
 0x1dc   :  { %v1046_v42 = vpop.f32.mrb[13].mxu1 }
 0x1dd   :  { %v1047_v43 = vadd.f32 %v1046_v42, %v1045_v40  ;;  %v1048_v44 = vpop.f32.mrb[14].mxu1  ;;  %838 = vadd.xlane.f32.xlu0 %v800_v41  ;;  %v801_v45 = vmul.f32 %v1467_v61, %v762_v39 }
 0x1de   :  { %v1049_v46 = vpop.f32.mrb[15].mxu1 }
 0x1df   :  { %v661_v47 = vadd.f32 %v1047_v43, %v1461_v57  ;;  %v1050_v48 = vadd.f32 %v1049_v46, %v1048_v44  ;;  %840 = vadd.xlane.f32.xlu1 %v801_v45 }
 0x1e1   :  { %v763_v49 = vmax.f32 %v661_v47, 0.0  ;;  %v664_v50 = vadd.f32 %v1050_v48, %v1461_v57 }
 0x1e3   :  { %v764_v51 = vmax.f32 %v664_v50, 0.0  ;;  %v1051_v52 = vpop.f32.mrb[16].mxu1  ;;  %v802_v53 = vmul.f32 %v1467_v61, %v763_v49 }
 0x1e4   :  { %v1052_v54 = vpop.f32.mrb[17].mxu1 }
 0x1e5   :  { %v1053_v55 = vadd.f32 %v1052_v54, %v1051_v52  ;;  %v1054_v56 = vpop.f32.mrb[18].mxu1  ;;  %842 = vadd.xlane.f32.xlu0 %v802_v53  ;;  %v803_v3 = vmul.f32 %v1467_v61, %v764_v51 }
 0x1e6   :  { %v1055_v58 = vpop.f32.mrb[19].mxu1 }
 0x1e7   :  { %v669_v59 = vadd.f32 %v1053_v55, %v1461_v57  ;;  %v1056_v60 = vadd.f32 %v1055_v58, %v1054_v56  ;;  %844 = vadd.xlane.f32.xlu1 %v803_v3 }
 0x1e9   :  { %v765_v16 = vmax.f32 %v669_v59, 0.0  ;;  %v672_v62 = vadd.f32 %v1056_v60, %v1461_v57 }
 0x1eb   :  { %v766_v63 = vmax.f32 %v672_v62, 0.0  ;;  %v1057_v0 = vpop.f32.mrb[20].mxu1  ;;  %v804_v1 = vmul.f32 %v1467_v61, %v765_v16 }
 0x1ec   :  { %v1058_v2 = vpop.f32.mrb[21].mxu1 }
 0x1ed   :  { %v1059_v4 = vadd.f32 %v1058_v2, %v1057_v0  ;;  %v1060_v5 = vpop.f32.mrb[22].mxu1  ;;  %846 = vadd.xlane.f32.xlu0 %v804_v1  ;;  %v805_v6 = vmul.f32 %v1467_v61, %v766_v63 }
 0x1ee   :  { %v1061_v7 = vpop.f32.mrb[23].mxu1 }
 0x1ef   :  { %v677_v8 = vadd.f32 %v1059_v4, %v1461_v57  ;;  %v1062_v9 = vadd.f32 %v1061_v7, %v1060_v5  ;;  %848 = vadd.xlane.f32.xlu1 %v805_v6 }
 0x1f1   :  { %v767_v10 = vmax.f32 %v677_v8, 0.0  ;;  %v680_v11 = vadd.f32 %v1062_v9, %v1461_v57 }
 0x1f3   :  { %v768_v12 = vmax.f32 %v680_v11, 0.0  ;;  %v1063_v13 = vpop.f32.mrb[24].mxu1  ;;  %v806_v14 = vmul.f32 %v1467_v61, %v767_v10 }
 0x1f4   :  { %v1064_v15 = vpop.f32.mrb[25].mxu1 }
 0x1f5   :  { %v1065_v17 = vadd.f32 %v1064_v15, %v1063_v13  ;;  %v1066_v18 = vpop.f32.mrb[26].mxu1  ;;  %850 = vadd.xlane.f32.xlu0 %v806_v14  ;;  %v807_v19 = vmul.f32 %v1467_v61, %v768_v12 }
 0x1f6   :  { %v1067_v20 = vpop.f32.mrb[27].mxu1 }
 0x1f7   :  { %v685_v21 = vadd.f32 %v1065_v17, %v1461_v57  ;;  %v1068_v22 = vadd.f32 %v1067_v20, %v1066_v18  ;;  %852 = vadd.xlane.f32.xlu1 %v807_v19 }
 0x1f9   :  { %v769_v23 = vmax.f32 %v685_v21, 0.0  ;;  %v688_v24 = vadd.f32 %v1068_v22, %v1461_v57 }
 0x1fb   :  { %v770_v25 = vmax.f32 %v688_v24, 0.0  ;;  %v1069_v26 = vpop.f32.mrb[28].mxu1  ;;  %v808_v27 = vmul.f32 %v1467_v61, %v769_v23 }
 0x1fc   :  { %v1070_v28 = vpop.f32.mrb[29].mxu1 }
 0x1fd   :  { %v1071_v29 = vadd.f32 %v1070_v28, %v1069_v26  ;;  %v1072_v30 = vpop.f32.mrb[30].mxu1  ;;  %854 = vadd.xlane.f32.xlu0 %v808_v27  ;;  %v809_v31 = vmul.f32 %v1467_v61, %v770_v25 }
 0x1fe   :  { %v1073_v32 = vpop.f32.mrb[31].mxu1 }
 0x1ff   :  { %v693_v33 = vadd.f32 %v1071_v29, %v1461_v57  ;;  %v1074_v34 = vadd.f32 %v1073_v32, %v1072_v30  ;;  %856 = vadd.xlane.f32.xlu1 %v809_v31 }
 0x201   :  { %v771_v35 = vmax.f32 %v693_v33, 0.0  ;;  %v696_v36 = vadd.f32 %v1074_v34, %v1461_v57 }
 0x203   :  { %v772_v37 = vmax.f32 %v696_v36, 0.0  ;;  %v1075_v38 = vpop.f32.mrb[32].mxu1  ;;  %v810_v39 = vmul.f32 %v1467_v61, %v771_v35 }
 0x204   :  { %v1076_v40 = vpop.f32.mrb[33].mxu1 }
 0x205   :  { %v1077_v41 = vadd.f32 %v1076_v40, %v1075_v38  ;;  %v1078_v42 = vpop.f32.mrb[34].mxu1  ;;  %858 = vadd.xlane.f32.xlu0 %v810_v39  ;;  %v811_v43 = vmul.f32 %v1467_v61, %v772_v37 }
 0x206   :  { %v1079_v44 = vpop.f32.mrb[35].mxu1 }
 0x207   :  { %v701_v45 = vadd.f32 %v1077_v41, %v1461_v57  ;;  %v1080_v46 = vadd.f32 %v1079_v44, %v1078_v42  ;;  %860 = vadd.xlane.f32.xlu1 %v811_v43 }
 0x209   :  { %v773_v47 = vmax.f32 %v701_v45, 0.0  ;;  %v704_v48 = vadd.f32 %v1080_v46, %v1461_v57 }
 0x20b   :  { %v774_v49 = vmax.f32 %v704_v48, 0.0  ;;  %v1081_v50 = vpop.f32.mrb[36].mxu1  ;;  %v812_v51 = vmul.f32 %v1467_v61, %v773_v47 }
 0x20c   :  { %v1082_v52 = vpop.f32.mrb[37].mxu1 }
 0x20d   :  { %v1083_v53 = vadd.f32 %v1082_v52, %v1081_v50  ;;  %v1084_v54 = vpop.f32.mrb[38].mxu1  ;;  %862 = vadd.xlane.f32.xlu0 %v812_v51  ;;  %v813_v55 = vmul.f32 %v1467_v61, %v774_v49 }
 0x20e   :  { %v1085_v56 = vpop.f32.mrb[39].mxu1 }
 0x20f   :  { %v709_v3 = vadd.f32 %v1083_v53, %v1461_v57  ;;  %v1086_v58 = vadd.f32 %v1085_v56, %v1084_v54  ;;  %864 = vadd.xlane.f32.xlu1 %v813_v55 }
 0x211   :  { %v775_v59 = vmax.f32 %v709_v3, 0.0  ;;  %v712_v60 = vadd.f32 %v1086_v58, %v1461_v57 }
 0x213   :  { %v776_v16 = vmax.f32 %v712_v60, 0.0  ;;  %v1087_v62 = vpop.f32.mrb[40].mxu1  ;;  %v814_v63 = vmul.f32 %v1467_v61, %v775_v59 }
 0x214   :  { %v1088_v0 = vpop.f32.mrb[41].mxu1 }
 0x215   :  { %v1089_v1 = vadd.f32 %v1088_v0, %v1087_v62  ;;  %v1090_v2 = vpop.f32.mrb[42].mxu1  ;;  %866 = vadd.xlane.f32.xlu0 %v814_v63  ;;  %v815_v4 = vmul.f32 %v1467_v61, %v776_v16  ;;  %v1535_v62 = vld [vmem:[#allocation2] ss:$0 sm:$0xff] }
 0x216   :  { %v1091_v5 = vpop.f32.mrb[43].mxu1 }
 0x217   :  { %v717_v6 = vadd.f32 %v1089_v1, %v1461_v57  ;;  %v1092_v7 = vadd.f32 %v1091_v5, %v1090_v2  ;;  %868 = vadd.xlane.f32.xlu1 %v815_v4 }
 0x219   :  { %v777_v8 = vmax.f32 %v717_v6, 0.0  ;;  %v720_v9 = vadd.f32 %v1092_v7, %v1461_v57 }
 0x21b   :  { %v778_v10 = vmax.f32 %v720_v9, 0.0  ;;  %v1093_v11 = vpop.f32.mrb[44].mxu1  ;;  %v816_v12 = vmul.f32 %v1467_v61, %v777_v8 }
 0x21c   :  { %v1094_v13 = vpop.f32.mrb[45].mxu1 }
 0x21d   :  { %v1095_v14 = vadd.f32 %v1094_v13, %v1093_v11  ;;  %v1096_v15 = vpop.f32.mrb[46].mxu1  ;;  %870 = vadd.xlane.f32.xlu0 %v816_v12  ;;  %v817_v17 = vmul.f32 %v1467_v61, %v778_v10 }
 0x21e   :  { %v1097_v18 = vpop.f32.mrb[47].mxu1 }
 0x21f   :  { %v725_v19 = vadd.f32 %v1095_v14, %v1461_v57  ;;  %v1098_v20 = vadd.f32 %v1097_v18, %v1096_v15  ;;  %872 = vadd.xlane.f32.xlu1 %v817_v17 }
 0x221   :  { %v779_v21 = vmax.f32 %v725_v19, 0.0  ;;  %v728_v22 = vadd.f32 %v1098_v20, %v1461_v57 }
 0x223   :  { %v780_v23 = vmax.f32 %v728_v22, 0.0  ;;  %v1099_v24 = vpop.f32.mrb[48].mxu1  ;;  %v818_v25 = vmul.f32 %v1467_v61, %v779_v21 }
 0x224   :  { %v1100_v26 = vpop.f32.mrb[49].mxu1 }
 0x225   :  { %v1101_v27 = vadd.f32 %v1100_v26, %v1099_v24  ;;  %v1102_v28 = vpop.f32.mrb[50].mxu1  ;;  %874 = vadd.xlane.f32.xlu0 %v818_v25  ;;  %v819_v29 = vmul.f32 %v1467_v61, %v780_v23 }
 0x226   :  { %v1103_v30 = vpop.f32.mrb[51].mxu1 }
 0x227   :  { %v733_v31 = vadd.f32 %v1101_v27, %v1461_v57  ;;  %v1104_v32 = vadd.f32 %v1103_v30, %v1102_v28  ;;  %876 = vadd.xlane.f32.xlu1 %v819_v29 }
 0x229   :  { %v781_v33 = vmax.f32 %v733_v31, 0.0  ;;  %v736_v34 = vadd.f32 %v1104_v32, %v1461_v57 }
 0x22b   :  { %v782_v35 = vmax.f32 %v736_v34, 0.0  ;;  %v1105_v36 = vpop.f32.mrb[52].mxu1  ;;  %v820_v37 = vmul.f32 %v1467_v61, %v781_v33 }
 0x22c   :  { %v1106_v38 = vpop.f32.mrb[53].mxu1 }
 0x22d   :  { %v1107_v39 = vadd.f32 %v1106_v38, %v1105_v36  ;;  %v1108_v40 = vpop.f32.mrb[54].mxu1  ;;  %878 = vadd.xlane.f32.xlu0 %v820_v37  ;;  %v821_v41 = vmul.f32 %v1467_v61, %v782_v35 }
 0x22e   :  { %v1109_v42 = vpop.f32.mrb[55].mxu1 }
 0x22f   :  { %v741_v43 = vadd.f32 %v1107_v39, %v1461_v57  ;;  %v1110_v44 = vadd.f32 %v1109_v42, %v1108_v40  ;;  %880 = vadd.xlane.f32.xlu1 %v821_v41 }
 0x231   :  { %v783_v45 = vmax.f32 %v741_v43, 0.0  ;;  %v744_v46 = vadd.f32 %v1110_v44, %v1461_v57 }
 0x233   :  { %v784_v47 = vmax.f32 %v744_v46, 0.0  ;;  %v1111_v48 = vpop.f32.mrb[56].mxu1  ;;  %v822_v49 = vmul.f32 %v1467_v61, %v783_v45 }
 0x234   :  { %v1112_v50 = vpop.f32.mrb[57].mxu1 }
 0x235   :  { %v1113_v51 = vadd.f32 %v1112_v50, %v1111_v48  ;;  %v1114_v52 = vpop.f32.mrb[58].mxu1  ;;  %882 = vadd.xlane.f32.xlu0 %v822_v49  ;;  %v823_v53 = vmul.f32 %v1467_v61, %v784_v47 }
 0x236   :  { %v1115_v54 = vpop.f32.mrb[59].mxu1 }
 0x237   :  { %v749_v55 = vadd.f32 %v1113_v51, %v1461_v57  ;;  %v1116_v56 = vadd.f32 %v1115_v54, %v1114_v52  ;;  %884 = vadd.xlane.f32.xlu1 %v823_v53 }
 0x239   :  { %v785_v3 = vmax.f32 %v749_v55, 0.0  ;;  %v752_v58 = vadd.f32 %v1116_v56, %v1461_v57 }
 0x23b   :  { %v786_v59 = vmax.f32 %v752_v58, 0.0  ;;  %v824_v60 = vmul.f32 %v1467_v61, %v785_v3 }
 0x23d   :  { %886 = vadd.xlane.f32.xlu0 %v824_v60  ;;  %v825_v16 = vmul.f32 %v1467_v61, %v786_v59 }
 0x23f   :  { %888 = vadd.xlane.f32.xlu1 %v825_v16 }
 0x252   :  { %v827_v63 = vpop.xlane.xlu0 %826 }
 0x253   :  { %v897_v0 = vadd.f32 %v1535_v62, %v827_v63 }
 0x255   :  { %930 = vst.msk [vmem:[%s1704_s7] sm:$0xff] %vm929_vm3, %v897_v0 }
 0x256   :  { %v829_v1 = vpop.xlane.xlu0 %828 }
 0x257   :  { %v898_v57 = vadd.f32 %v1535_v62, %v829_v1 }
 0x259   :  { %931 = vst.msk [vmem:[%s1704_s7 + $0x8] sm:$0xff] %vm929_vm3, %v898_v57 }
 0x25a   :  { %v831_v61 = vpop.xlane.xlu1 %830 }
 0x25b   :  { %v899_v2 = vadd.f32 %v1535_v62, %v831_v61 }
 0x25d   :  { %932 = vst.msk [vmem:[%s1704_s7 + $0x10] sm:$0xff] %vm929_vm3, %v899_v2 }
 0x25e   :  { %v833_v4 = vpop.xlane.xlu1 %832 }
 0x25f   :  { %v900_v5 = vadd.f32 %v1535_v62, %v833_v4 }
 0x261   :  { %933 = vst.msk [vmem:[%s1704_s7 + $0x18] sm:$0xff] %vm929_vm3, %v900_v5 }
 0x262   :  { %v835_v6 = vpop.xlane.xlu0 %834 }
 0x263   :  { %v901_v7 = vadd.f32 %v1535_v62, %v835_v6 }
 0x264   :  { %v837_v8 = vpop.xlane.xlu1 %836 }
 0x265   :  { %934 = vst.msk [vmem:[%s1704_s7 + $0x20] sm:$0xff] %vm929_vm3, %v901_v7  ;;  %v902_v9 = vadd.f32 %v1535_v62, %v837_v8 }
 0x267   :  { %935 = vst.msk [vmem:[%s1704_s7 + $0x28] sm:$0xff] %vm929_vm3, %v902_v9 }
 0x26a   :  { %v839_v10 = vpop.xlane.xlu0 %838 }
 0x26b   :  { %v903_v11 = vadd.f32 %v1535_v62, %v839_v10 }
 0x26c   :  { %v841_v12 = vpop.xlane.xlu1 %840 }
 0x26d   :  { %936 = vst.msk [vmem:[%s1704_s7 + $0x30] sm:$0xff] %vm929_vm3, %v903_v11  ;;  %v904_v13 = vadd.f32 %v1535_v62, %v841_v12 }
 0x26f   :  { %937 = vst.msk [vmem:[%s1704_s7 + $0x38] sm:$0xff] %vm929_vm3, %v904_v13 }
 0x272   :  { %v843_v14 = vpop.xlane.xlu0 %842 }
 0x273   :  { %v905_v15 = vadd.f32 %v1535_v62, %v843_v14 }
 0x274   :  { %v845_v17 = vpop.xlane.xlu1 %844 }
 0x275   :  { %938 = vst.msk [vmem:[%s1704_s7 + $0x40] sm:$0xff] %vm929_vm3, %v905_v15  ;;  %v906_v18 = vadd.f32 %v1535_v62, %v845_v17 }
 0x277   :  { %939 = vst.msk [vmem:[%s1704_s7 + $0x48] sm:$0xff] %vm929_vm3, %v906_v18 }
 0x27a   :  { %v847_v19 = vpop.xlane.xlu0 %846 }
 0x27b   :  { %v907_v20 = vadd.f32 %v1535_v62, %v847_v19 }
 0x27c   :  { %v849_v21 = vpop.xlane.xlu1 %848 }
 0x27d   :  { %940 = vst.msk [vmem:[%s1704_s7 + $0x50] sm:$0xff] %vm929_vm3, %v907_v20  ;;  %v908_v22 = vadd.f32 %v1535_v62, %v849_v21 }
 0x27f   :  { %941 = vst.msk [vmem:[%s1704_s7 + $0x58] sm:$0xff] %vm929_vm3, %v908_v22 }
 0x282   :  { %v851_v23 = vpop.xlane.xlu0 %850 }
 0x283   :  { %v909_v24 = vadd.f32 %v1535_v62, %v851_v23 }
 0x284   :  { %v853_v25 = vpop.xlane.xlu1 %852 }
 0x285   :  { %942 = vst.msk [vmem:[%s1704_s7 + $0x60] sm:$0xff] %vm929_vm3, %v909_v24  ;;  %v910_v26 = vadd.f32 %v1535_v62, %v853_v25 }
 0x287   :  { %943 = vst.msk [vmem:[%s1704_s7 + $0x68] sm:$0xff] %vm929_vm3, %v910_v26 }
 0x28a   :  { %v855_v27 = vpop.xlane.xlu0 %854 }
 0x28b   :  { %v911_v28 = vadd.f32 %v1535_v62, %v855_v27 }
 0x28c   :  { %v857_v29 = vpop.xlane.xlu1 %856 }
 0x28d   :  { %944 = vst.msk [vmem:[%s1704_s7 + $0x70] sm:$0xff] %vm929_vm3, %v911_v28  ;;  %v912_v30 = vadd.f32 %v1535_v62, %v857_v29 }
 0x28f   :  { %945 = vst.msk [vmem:[%s1704_s7 + $0x78] sm:$0xff] %vm929_vm3, %v912_v30 }
 0x292   :  { %v859_v31 = vpop.xlane.xlu0 %858 }
 0x293   :  { %v913_v32 = vadd.f32 %v1535_v62, %v859_v31 }
 0x294   :  { %v861_v33 = vpop.xlane.xlu1 %860 }
 0x295   :  { %946 = vst.msk [vmem:[%s1704_s7 + $0x80] sm:$0xff] %vm929_vm3, %v913_v32  ;;  %v914_v34 = vadd.f32 %v1535_v62, %v861_v33 }
 0x297   :  { %947 = vst.msk [vmem:[%s1704_s7 + $0x88] sm:$0xff] %vm929_vm3, %v914_v34 }
 0x29a   :  { %v863_v35 = vpop.xlane.xlu0 %862 }
 0x29b   :  { %v915_v36 = vadd.f32 %v1535_v62, %v863_v35 }
 0x29c   :  { %v865_v37 = vpop.xlane.xlu1 %864 }
 0x29d   :  { %948 = vst.msk [vmem:[%s1704_s7 + $0x90] sm:$0xff] %vm929_vm3, %v915_v36  ;;  %v916_v38 = vadd.f32 %v1535_v62, %v865_v37 }
 0x29f   :  { %949 = vst.msk [vmem:[%s1704_s7 + $0x98] sm:$0xff] %vm929_vm3, %v916_v38 }
 0x2a2   :  { %v867_v39 = vpop.xlane.xlu0 %866 }
 0x2a3   :  { %v917_v40 = vadd.f32 %v1535_v62, %v867_v39 }
 0x2a4   :  { %v869_v41 = vpop.xlane.xlu1 %868 }
 0x2a5   :  { %950 = vst.msk [vmem:[%s1704_s7 + $0xa0] sm:$0xff] %vm929_vm3, %v917_v40  ;;  %v918_v42 = vadd.f32 %v1535_v62, %v869_v41 }
 0x2a7   :  { %951 = vst.msk [vmem:[%s1704_s7 + $0xa8] sm:$0xff] %vm929_vm3, %v918_v42 }
 0x2aa   :  { %v871_v43 = vpop.xlane.xlu0 %870 }
 0x2ab   :  { %v919_v44 = vadd.f32 %v1535_v62, %v871_v43 }
 0x2ac   :  { %v873_v45 = vpop.xlane.xlu1 %872 }
 0x2ad   :  { %952 = vst.msk [vmem:[%s1704_s7 + $0xb0] sm:$0xff] %vm929_vm3, %v919_v44  ;;  %v920_v46 = vadd.f32 %v1535_v62, %v873_v45 }
 0x2af   :  { %953 = vst.msk [vmem:[%s1704_s7 + $0xb8] sm:$0xff] %vm929_vm3, %v920_v46 }
 0x2b2   :  { %v875_v47 = vpop.xlane.xlu0 %874 }
 0x2b3   :  { %v921_v48 = vadd.f32 %v1535_v62, %v875_v47 }
 0x2b4   :  { %v877_v49 = vpop.xlane.xlu1 %876 }
 0x2b5   :  { %954 = vst.msk [vmem:[%s1704_s7 + $0xc0] sm:$0xff] %vm929_vm3, %v921_v48  ;;  %v922_v50 = vadd.f32 %v1535_v62, %v877_v49 }
 0x2b7   :  { %955 = vst.msk [vmem:[%s1704_s7 + $0xc8] sm:$0xff] %vm929_vm3, %v922_v50 }
 0x2ba   :  { %v879_v51 = vpop.xlane.xlu0 %878 }
 0x2bb   :  { %v923_v52 = vadd.f32 %v1535_v62, %v879_v51 }
 0x2bc   :  { %v881_v53 = vpop.xlane.xlu1 %880 }
 0x2bd   :  { %956 = vst.msk [vmem:[%s1704_s7 + $0xd0] sm:$0xff] %vm929_vm3, %v923_v52  ;;  %v924_v54 = vadd.f32 %v1535_v62, %v881_v53 }
 0x2bf   :  { %957 = vst.msk [vmem:[%s1704_s7 + $0xd8] sm:$0xff] %vm929_vm3, %v924_v54 }
 0x2c2   :  { %v883_v55 = vpop.xlane.xlu0 %882 }
 0x2c3   :  { %v925_v56 = vadd.f32 %v1535_v62, %v883_v55 }
 0x2c4   :  { %v885_v3 = vpop.xlane.xlu1 %884 }
 0x2c5   :  { %958 = vst.msk [vmem:[%s1704_s7 + $0xe0] sm:$0xff] %vm929_vm3, %v925_v56  ;;  %v926_v58 = vadd.f32 %v1535_v62, %v885_v3 }
 0x2c7   :  { %959 = vst.msk [vmem:[%s1704_s7 + $0xe8] sm:$0xff] %vm929_vm3, %v926_v58 }
 0x2ca   :  { %v887_v59 = vpop.xlane.xlu0 %886 }
 0x2cb   :  { %v927_v60 = vadd.f32 %v1535_v62, %v887_v59 }
 0x2cc   :  { %v889_v16 = vpop.xlane.xlu1 %888 }
 0x2cd   :  { %960 = vst.msk [vmem:[%s1704_s7 + $0xf0] sm:$0xff] %vm929_vm3, %v927_v60  ;;  %v928_v63 = vadd.f32 %v1535_v62, %v889_v16 }
 0x2cf   :  { %961 = vst.msk [vmem:[%s1704_s7 + $0xf8] sm:$0xff] %vm929_vm3, %v928_v63 }

</bundles_post_ra>
